<compile_context>
chip_gen: v5e
topology: v5e:2x2
jax: 0.10.0
libtpu: 0.0.40
codegen_flags: <defaults>
</compile_context>

<pallas_src>
import functools

import jax
import jax.numpy as jnp
from jax.experimental import pallas as pl
from jax.experimental.pallas import tpu as pltpu


# ----------------------------------------------------------------------------
# Shared math (used bit-identically by the Pallas kernel and the JAX reference)
# ----------------------------------------------------------------------------
def _srl(x, n):
    """Logical right shift on int32 (shape/dtype-matched operands)."""
    return jax.lax.shift_right_logical(x, jnp.full_like(x, n))


def _keep_mask(shape, seed):
    """Deterministic keep-mask for p=0.5 dropout.

    Murmur/splitmix-style integer hash of (row, col, seed); the keep decision is a
    full-width threshold at 2^31, i.e. the sign bit of the well-mixed hash.
    """
    r = jax.lax.broadcasted_iota(jnp.int32, shape, 0)
    c = jax.lax.broadcasted_iota(jnp.int32, shape, 1)
    h = seed + r * jnp.int32(-1640531527) + c * jnp.int32(-2048144789)  # 0x9E3779B9, 0x85EBCA6B
    h = h ^ _srl(h, 16)
    h = h * jnp.int32(0x7FEB352D)
    h = h ^ _srl(h, 15)
    h = h * jnp.int32(-2073254261)                                      # 0x846CA68B
    h = h ^ _srl(h, 16)
    return h >= 0  # P(keep) = 0.5


def _gcn_layer(a_bf, x, w, b, ax_first):
    """relu(A_hat @ X @ W + b) with bf16 MXU inputs and f32 accumulation/epilogue."""
    w_bf = w.astype(jnp.bfloat16)
    x_bf = x.astype(jnp.bfloat16)
    if ax_first:  # F_in < F_out: contract over the smaller feature dim first
        t = jnp.dot(a_bf, x_bf, preferred_element_type=jnp.float32)
        h = jnp.dot(t.astype(jnp.bfloat16), w_bf, preferred_element_type=jnp.float32)
    else:
        t = jnp.dot(x_bf, w_bf, preferred_element_type=jnp.float32)
        h = jnp.dot(a_bf, t.astype(jnp.bfloat16), preferred_element_type=jnp.float32)
    return jnp.maximum(h + b, 0.0)


# ----------------------------------------------------------------------------
# Fused Pallas kernel: dropout + all GCN layers in one shot
# ----------------------------------------------------------------------------
def _fused_gcn_kernel(seed_ref, x_ref, a_ref, w_ref, b_ref, o_ref, *, orders):
    # --- F.dropout(x), p = 0.5 (training=True default), scale by 1/(1-p) = 2 ---
    keep = _keep_mask(x_ref.shape, seed_ref[0])
    h = jnp.where(keep, x_ref[...] * 2.0, 0.0)

    # adjacency (bf16) loaded once, resident in VMEM for every layer
    a_bf = a_ref[...]

    # statically unrolled layer loop; intermediates never leave VMEM
    for l, ax_first in enumerate(orders):
        h = _gcn_layer(a_bf, h, w_ref[l], b_ref[l], ax_first)

    o_ref[...] = h  # (N_pad, 128) f32 -- lane-dense store


_VMEM = pl.BlockSpec(memory_space=pltpu.MemorySpace.VMEM)
_SMEM = pl.BlockSpec(memory_space=pltpu.MemorySpace.SMEM)


# ----------------------------------------------------------------------------
# Glue: dense normalized adjacency from edge_index, parameter init, model
# ----------------------------------------------------------------------------
def gcn_normalized_adjacency(edge_index, num_nodes):
    """D^-1/2 (A + I) D^-1/2 as a dense (N, N) float32 matrix (PyG convention)."""
    src, dst = edge_index[0], edge_index[1]
    adj = jnp.zeros((num_nodes, num_nodes), jnp.float32).at[dst, src].set(1.0)
    adj = adj + jnp.eye(num_nodes, dtype=jnp.float32)  # self-loops
    deg = adj.sum(axis=1)
    d_inv_sqrt = jnp.where(deg > 0, 1.0 / jnp.sqrt(deg), 0.0)
    return d_inv_sqrt[:, None] * adj * d_inv_sqrt[None, :]


def glorot(key, fan_in, fan_out):
    limit = jnp.sqrt(6.0 / (fan_in + fan_out))
    return jax.random.uniform(key, (fan_in, fan_out), jnp.float32, -limit, limit)


class ConvGraphNet:
    """Pallas port of the PyTorch ConvGraphNet (dropout + GCNConv/ReLU stack)."""

    F_PAD_UNIT = 128  # lane width

    def __init__(self, input_dim, hidden_sizes, output_dim=1, *, key):
        dims = [input_dim] + list(hidden_sizes) + [output_dim]
        self.output_dim = output_dim
        self.f_pad = self.F_PAD_UNIT * max(1, -(-max(dims) // self.F_PAD_UNIT))

        w_list, b_list, orders = [], [], []
        for i in range(len(dims) - 1):
            key, wk = jax.random.split(key)
            f_in, f_out = dims[i], dims[i + 1]
            w = glorot(wk, f_in, f_out)
            w_pad = jnp.zeros((self.f_pad, self.f_pad), jnp.float32).at[:f_in, :f_out].set(w)
            b_pad = jnp.zeros((1, self.f_pad), jnp.float32)  # GCNConv bias init = zeros
            w_list.append(w_pad)
            b_list.append(b_pad)
            orders.append(f_in < f_out)  # True -> compute (A @ X) @ W
        self.w_stack = jnp.stack(w_list)          # (L, 128, 128) f32
        self.b_stack = jnp.stack(b_list)          # (L, 1, 128)   f32
        self.orders = tuple(orders)

    # ---- padding helpers (shared by kernel wrapper and pure-JAX reference) ----
    def _pad_inputs(self, x, adj_norm):
        n, f_in = x.shape
        n_pad = -(-n // 8) * 8  # sublane-align the node dim
        x_p = jnp.zeros((n_pad, self.f_pad), jnp.float32).at[:n, :f_in].set(x)
        a_p = jnp.zeros((n_pad, n_pad), jnp.float32).at[:n, :n].set(adj_norm)
        return x_p, a_p.astype(jnp.bfloat16)

    # ---- fused Pallas forward ----
    @functools.partial(jax.jit, static_argnums=0)
    def forward(self, x, adj_norm, seed):
        n = x.shape[0]
        x_p, a_bf = self._pad_inputs(x, adj_norm)
        seed_arr = jnp.asarray(seed, jnp.int32).reshape(1)

        out_pad = pl.pallas_call(
            functools.partial(_fused_gcn_kernel, orders=self.orders),
            out_shape=jax.ShapeDtypeStruct((x_p.shape[0], self.f_pad), jnp.float32),
            in_specs=[_SMEM, _VMEM, _VMEM, _VMEM, _VMEM],
            out_specs=_VMEM,
        )(seed_arr, x_p, a_bf, self.w_stack, self.b_stack)

        return out_pad[:n, : self.output_dim]

    # ---- pure-JAX reference (identical math, for correctness checking) ----
    def reference_forward(self, x, adj_norm, seed):
        n = x.shape[0]
        x_p, a_bf = self._pad_inputs(x, adj_norm)
        keep = _keep_mask(x_p.shape, jnp.asarray(seed, jnp.int32))
        h = jnp.where(keep, x_p * 2.0, 0.0)
        for l, ax_first in enumerate(self.orders):
            h = _gcn_layer(a_bf, h, self.w_stack[l], self.b_stack[l], ax_first)
        return h[:n, : self.output_dim]


# ----------------------------------------------------------------------------
# Main
# ----------------------------------------------------------------------------
if __name__ == "__main__":
    key = jax.random.PRNGKey(0)
    kx, ke, kp = jax.random.split(key, 3)

    N = 64
    INPUT_DIM = 16
    HIDDEN = [32, 32]
    OUTPUT_DIM = 1

    # deterministic node features
    x = jax.random.normal(kx, (N, INPUT_DIM), jnp.float32)

    # deterministic edge_index: bidirectional ring + a few chords -> (2, 192)
    ring_src = jnp.arange(N, dtype=jnp.int32)
    ring_dst = (ring_src + 1) % N
    chords_src = jax.random.randint(ke, (32,), 0, N, jnp.int32)
    chords_dst = (chords_src * 7 + 3) % N
    src = jnp.concatenate([ring_src, ring_dst, chords_src, chords_dst])
    dst = jnp.concatenate([ring_dst, ring_src, chords_dst, chords_src])
    edge_index = jnp.stack([src, dst], axis=0)

    # GCNConv's edge_index normalization (irregular scatter) is built once in plain JAX.
    adj_norm = gcn_normalized_adjacency(edge_index, N)

    model = ConvGraphNet(INPUT_DIM, HIDDEN, OUTPUT_DIM, key=kp)

    seed = 0  # runtime dropout seed (vary per training step in real use)
    out = jax.block_until_ready(model.forward(x, adj_norm, seed))
    assert out.shape == (N, OUTPUT_DIM), out.shape

    # correctness: fused Pallas kernel vs pure-JAX reference with identical
    # dropout mask and identical bf16/f32 mixed-precision math
    ref = jax.block_until_ready(model.reference_forward(x, adj_norm, seed))
    assert jnp.allclose(out, ref, atol=1e-2, rtol=1e-2), float(jnp.max(jnp.abs(out - ref)))

    print("KERNEL_OK")
</pallas_src>

<mosaic_0001>
module attributes {stable_mosaic.version = 11 : i64} {
  func.func @_fused_gcn_kernel(%arg0: memref<1xi32, #tpu.memory_space<smem>>, %arg1: memref<64x128xf32, #tpu.memory_space<vmem>>, %arg2: memref<64x64xbf16, #tpu.memory_space<vmem>>, %arg3: memref<3x128x128xf32, #tpu.memory_space<vmem>>, %arg4: memref<3x1x128xf32, #tpu.memory_space<vmem>>, %arg5: memref<64x128xf32, #tpu.memory_space<vmem>>) attributes {dimension_semantics = [], scalar_prefetch = 0 : i64, scratch_operands = 0 : i64, tpu.core_type = #tpu.core_type<tc>} {
    %c0 = arith.constant 0 : index
    %0 = memref.load %arg0[%c0] : memref<1xi32, #tpu.memory_space<smem>>
    %1 = tpu.iota {dimensions = array<i32: 0>} : vector<64x128xi32>
    %2 = tpu.iota {dimensions = array<i32: 1>} : vector<64x128xi32>
    %c-1640531527_i32 = arith.constant -1640531527 : i32
    %3 = vector.broadcast %c-1640531527_i32 : i32 to vector<64x128xi32>
    %4 = arith.muli %1, %3 : vector<64x128xi32>
    %5 = vector.broadcast %0 : i32 to vector<64x128xi32>
    %6 = arith.addi %5, %4 : vector<64x128xi32>
    %c-2048144789_i32 = arith.constant -2048144789 : i32
    %7 = vector.broadcast %c-2048144789_i32 : i32 to vector<64x128xi32>
    %8 = arith.muli %2, %7 : vector<64x128xi32>
    %9 = arith.addi %6, %8 : vector<64x128xi32>
    %c16_i32 = arith.constant 16 : i32
    %10 = vector.broadcast %c16_i32 : i32 to vector<64x128xi32>
    %11 = arith.shrui %9, %10 : vector<64x128xi32>
    %12 = arith.xori %9, %11 : vector<64x128xi32>
    %c2146121005_i32 = arith.constant 2146121005 : i32
    %13 = vector.broadcast %c2146121005_i32 : i32 to vector<64x128xi32>
    %14 = arith.muli %12, %13 : vector<64x128xi32>
    %c15_i32 = arith.constant 15 : i32
    %15 = vector.broadcast %c15_i32 : i32 to vector<64x128xi32>
    %16 = arith.shrui %14, %15 : vector<64x128xi32>
    %17 = arith.xori %14, %16 : vector<64x128xi32>
    %c-2073254261_i32 = arith.constant -2073254261 : i32
    %18 = vector.broadcast %c-2073254261_i32 : i32 to vector<64x128xi32>
    %19 = arith.muli %17, %18 : vector<64x128xi32>
    %c16_i32_0 = arith.constant 16 : i32
    %20 = vector.broadcast %c16_i32_0 : i32 to vector<64x128xi32>
    %21 = arith.shrui %19, %20 : vector<64x128xi32>
    %22 = arith.xori %19, %21 : vector<64x128xi32>
    %c0_i32 = arith.constant 0 : i32
    %23 = vector.broadcast %c0_i32 : i32 to vector<64x128xi32>
    %24 = arith.cmpi sge, %22, %23 : vector<64x128xi32>
    %c0_1 = arith.constant 0 : index
    %c0_2 = arith.constant 0 : index
    %25 = vector.load %arg1[%c0_1, %c0_2] : memref<64x128xf32, #tpu.memory_space<vmem>>, vector<64x128xf32>
    %cst = arith.constant 2.000000e+00 : f32
    %26 = vector.broadcast %cst : f32 to vector<64x128xf32>
    %27 = arith.mulf %25, %26 : vector<64x128xf32>
    %cst_3 = arith.constant 0.000000e+00 : f32
    %28 = vector.broadcast %cst_3 : f32 to vector<64x128xf32>
    %29 = arith.select %24, %27, %28 : vector<64x128xi1>, vector<64x128xf32>
    %c0_4 = arith.constant 0 : index
    %c0_5 = arith.constant 0 : index
    %30 = vector.load %arg2[%c0_4, %c0_5] : memref<64x64xbf16, #tpu.memory_space<vmem>>, vector<64x64xbf16>
    %c0_6 = arith.constant 0 : index
    %c0_7 = arith.constant 0 : index
    %c0_8 = arith.constant 0 : index
    %31 = vector.load %arg3[%c0_6, %c0_7, %c0_8] : memref<3x128x128xf32, #tpu.memory_space<vmem>>, vector<1x128x128xf32>
    %32 = vector.shape_cast %31 : vector<1x128x128xf32> to vector<128x128xf32>
    %c0_9 = arith.constant 0 : index
    %c0_10 = arith.constant 0 : index
    %c0_11 = arith.constant 0 : index
    %33 = vector.load %arg4[%c0_9, %c0_10, %c0_11] : memref<3x1x128xf32, #tpu.memory_space<vmem>>, vector<1x1x128xf32>
    %34 = vector.shape_cast %33 : vector<1x1x128xf32> to vector<1x128xf32>
    %35 = arith.truncf %32 : vector<128x128xf32> to vector<128x128xbf16>
    %36 = arith.truncf %29 : vector<64x128xf32> to vector<64x128xbf16>
    %cst_12 = arith.constant dense<0.000000e+00> : vector<64x128xf32>
    %37 = tpu.matmul %30, %36, %cst_12 {dimension_numbers = #tpu.dot_dimension_numbers<[1], [0], [0], [1], [0, 0, 1, 1], [], []>} : vector<64x64xbf16>, vector<64x128xbf16>, vector<64x128xf32> -> vector<64x128xf32>
    %38 = arith.truncf %37 : vector<64x128xf32> to vector<64x128xbf16>
    %cst_13 = arith.constant dense<0.000000e+00> : vector<64x128xf32>
    %39 = tpu.matmul %38, %35, %cst_13 {dimension_numbers = #tpu.dot_dimension_numbers<[1], [0], [0], [1], [0, 0, 1, 1], [], []>} : vector<64x128xbf16>, vector<128x128xbf16>, vector<64x128xf32> -> vector<64x128xf32>
    %40 = vector.broadcast %34 : vector<1x128xf32> to vector<64x128xf32>
    %41 = arith.addf %39, %40 : vector<64x128xf32>
    %cst_14 = arith.constant 0.000000e+00 : f32
    %42 = vector.broadcast %cst_14 : f32 to vector<64x128xf32>
    %43 = arith.maximumf %41, %42 : vector<64x128xf32>
    %c1 = arith.constant 1 : index
    %c0_15 = arith.constant 0 : index
    %c0_16 = arith.constant 0 : index
    %44 = vector.load %arg3[%c1, %c0_15, %c0_16] : memref<3x128x128xf32, #tpu.memory_space<vmem>>, vector<1x128x128xf32>
    %45 = vector.shape_cast %44 : vector<1x128x128xf32> to vector<128x128xf32>
    %c1_17 = arith.constant 1 : index
    %c0_18 = arith.constant 0 : index
    %c0_19 = arith.constant 0 : index
    %46 = vector.load %arg4[%c1_17, %c0_18, %c0_19] : memref<3x1x128xf32, #tpu.memory_space<vmem>>, vector<1x1x128xf32>
    %47 = vector.shape_cast %46 : vector<1x1x128xf32> to vector<1x128xf32>
    %48 = arith.truncf %45 : vector<128x128xf32> to vector<128x128xbf16>
    %49 = arith.truncf %43 : vector<64x128xf32> to vector<64x128xbf16>
    %cst_20 = arith.constant dense<0.000000e+00> : vector<64x128xf32>
    %50 = tpu.matmul %49, %48, %cst_20 {dimension_numbers = #tpu.dot_dimension_numbers<[1], [0], [0], [1], [0, 0, 1, 1], [], []>} : vector<64x128xbf16>, vector<128x128xbf16>, vector<64x128xf32> -> vector<64x128xf32>
    %51 = arith.truncf %50 : vector<64x128xf32> to vector<64x128xbf16>
    %cst_21 = arith.constant dense<0.000000e+00> : vector<64x128xf32>
    %52 = tpu.matmul %30, %51, %cst_21 {dimension_numbers = #tpu.dot_dimension_numbers<[1], [0], [0], [1], [0, 0, 1, 1], [], []>} : vector<64x64xbf16>, vector<64x128xbf16>, vector<64x128xf32> -> vector<64x128xf32>
    %53 = vector.broadcast %47 : vector<1x128xf32> to vector<64x128xf32>
    %54 = arith.addf %52, %53 : vector<64x128xf32>
    %cst_22 = arith.constant 0.000000e+00 : f32
    %55 = vector.broadcast %cst_22 : f32 to vector<64x128xf32>
    %56 = arith.maximumf %54, %55 : vector<64x128xf32>
    %c2 = arith.constant 2 : index
    %c0_23 = arith.constant 0 : index
    %c0_24 = arith.constant 0 : index
    %57 = vector.load %arg3[%c2, %c0_23, %c0_24] : memref<3x128x128xf32, #tpu.memory_space<vmem>>, vector<1x128x128xf32>
    %58 = vector.shape_cast %57 : vector<1x128x128xf32> to vector<128x128xf32>
    %c2_25 = arith.constant 2 : index
    %c0_26 = arith.constant 0 : index
    %c0_27 = arith.constant 0 : index
    %59 = vector.load %arg4[%c2_25, %c0_26, %c0_27] : memref<3x1x128xf32, #tpu.memory_space<vmem>>, vector<1x1x128xf32>
    %60 = vector.shape_cast %59 : vector<1x1x128xf32> to vector<1x128xf32>
    %61 = arith.truncf %58 : vector<128x128xf32> to vector<128x128xbf16>
    %62 = arith.truncf %56 : vector<64x128xf32> to vector<64x128xbf16>
    %cst_28 = arith.constant dense<0.000000e+00> : vector<64x128xf32>
    %63 = tpu.matmul %62, %61, %cst_28 {dimension_numbers = #tpu.dot_dimension_numbers<[1], [0], [0], [1], [0, 0, 1, 1], [], []>} : vector<64x128xbf16>, vector<128x128xbf16>, vector<64x128xf32> -> vector<64x128xf32>
    %64 = arith.truncf %63 : vector<64x128xf32> to vector<64x128xbf16>
    %cst_29 = arith.constant dense<0.000000e+00> : vector<64x128xf32>
    %65 = tpu.matmul %30, %64, %cst_29 {dimension_numbers = #tpu.dot_dimension_numbers<[1], [0], [0], [1], [0, 0, 1, 1], [], []>} : vector<64x64xbf16>, vector<64x128xbf16>, vector<64x128xf32> -> vector<64x128xf32>
    %66 = vector.broadcast %60 : vector<1x128xf32> to vector<64x128xf32>
    %67 = arith.addf %65, %66 : vector<64x128xf32>
    %cst_30 = arith.constant 0.000000e+00 : f32
    %68 = vector.broadcast %cst_30 : f32 to vector<64x128xf32>
    %69 = arith.maximumf %67, %68 : vector<64x128xf32>
    %c0_31 = arith.constant 0 : index
    %c0_32 = arith.constant 0 : index
    %70 = vector.load %arg5[%c0_31, %c0_32] : memref<64x128xf32, #tpu.memory_space<vmem>>, vector<64x128xf32>
    tpu.vector_store %arg5[%c0_31, %c0_32], %69 {strides = array<i32>} : memref<64x128xf32, #tpu.memory_space<vmem>>, vector<64x128xf32>,
    return
  }
}

</mosaic_0001>

<bundles_post_ra>
// kernel: forward.1
= control target key start
LH: loop header
LB: loop body
LE: loop exit
PB: predicated region body
PF: predicated region fallthrough
CT: control target
= control target key end

     0   :  { %v23_v0 = vlaneseq  ;;  %vm213_vm12 = vcmask 523264   ;;  %s898_s0 = inlined_call_operand.<no memory space> [shape: s32[1], index: 0, kind: input, shape index: {}]   ;;  %s899_s1 = inlined_call_operand.vmem [shape: f32[64,128], index: 1, kind: input, shape index: {}]   ;;  %s900_s3 = inlined_call_operand.vmem [shape: f32[3,128,128], index: 3, kind: input, shape index: {}]   ;;  %s901_s2 = inlined_call_operand.vmem [shape: bf16[64,64], index: 2, kind: input, shape index: {}]   ;;  %s902_s4 = inlined_call_operand.vmem [shape: f32[3,1,128], index: 4, kind: input, shape index: {}]   ;;  %s903_s5 = inlined_call_operand.vmem [shape: f32[64,128], index: 5, kind: output, shape index: {}]  }
   0x1   :  { %v138_v1 = vld [vmem:[%s899_s1 + $0x30] sm:$0xff]  ;;  %v139_v2 = vld [vmem:[%s899_s1 + $0x38] sm:$0xff]  ;;  %v42_v5 = vstv %s898_s0  ;;  %v136_v6 = vld [vmem:[%s899_s1 + $0x20] sm:$0xff] }
   0x2   :  { %v24_v3 = vshrl.u32 %v23_v0, 7  ;;  %v33_v4 = vand.u32 127, %v23_v0  ;;  %v650_v9 = vmul.f32 2.0, %v138_v1  ;;  %v652_v10 = vmul.f32 2.0, %v139_v2  ;;  %v137_v14 = vld [vmem:[%s899_s1 + $0x28] sm:$0xff] }
   0x3   :  { %v657_v18 = vmul.f32 2.0, %v136_v6  ;;  %v659_v25 = vmul.f32 2.0, %v137_v14 }
   0x4   :  { %v30_v7 = vadd.s32 48, %v24_v3  ;;  %v31_v8 = vadd.s32 56, %v24_v3  ;;  %v51_v11 = vmul.u32 2246822507, %v33_v4  ;;  %v28_v12 = vadd.s32 32, %v24_v3 }
   0x5   :  { %v29_v13 = vadd.s32 40, %v24_v3  ;;  %v26_v15 = vadd.s32 16, %v24_v3  ;;  %v27_v19 = vadd.s32 24, %v24_v3  ;;  %v25_v30 = vadd.s32 8, %v24_v3 }
   0x6   :  { %v40_v16 = vmul.u32 2654435769, %v30_v7  ;;  %v41_v17 = vmul.u32 2654435769, %v31_v8  ;;  %v38_v20 = vmul.u32 2654435769, %v28_v12 }
   0x7   :  { %v39_v21 = vmul.u32 2654435769, %v29_v13  ;;  %v36_v22 = vmul.u32 2654435769, %v26_v15  ;;  %v37_v26 = vmul.u32 2654435769, %v27_v19 }
   0x8   :  { %v49_v23 = vadd.s32 %v42_v5, %v40_v16  ;;  %v50_v24 = vadd.s32 %v42_v5, %v41_v17  ;;  %v47_v27 = vadd.s32 %v42_v5, %v38_v20  ;;  %v34_v34 = vmul.u32 2654435769, %v24_v3 }
   0x9   :  { %v48_v28 = vadd.s32 %v42_v5, %v39_v21  ;;  %v45_v29 = vadd.s32 %v42_v5, %v36_v22  ;;  %v46_v33 = vadd.s32 %v42_v5, %v37_v26  ;;  %v35_v38 = vmul.u32 2654435769, %v25_v30 }
   0xa   :  { %v58_v31 = vadd.s32 %v51_v11, %v49_v23  ;;  %v59_v32 = vadd.s32 %v51_v11, %v50_v24  ;;  %v56_v35 = vadd.s32 %v51_v11, %v47_v27  ;;  %v43_v42 = vadd.s32 %v42_v5, %v34_v34 }
   0xb   :  { %v57_v36 = vadd.s32 %v51_v11, %v48_v28  ;;  %v54_v37 = vadd.s32 %v51_v11, %v45_v29  ;;  %v55_v41 = vadd.s32 %v51_v11, %v46_v33  ;;  %v44_v46 = vadd.s32 %v42_v5, %v35_v38 }
   0xc   :  { %v66_v39 = vshrl.u32 %v58_v31, 16  ;;  %v67_v40 = vshrl.u32 %v59_v32, 16  ;;  %v64_v43 = vshrl.u32 %v56_v35, 16  ;;  %v52_v50 = vadd.s32 %v51_v11, %v43_v42 }
   0xd   :  { %v65_v44 = vshrl.u32 %v57_v36, 16  ;;  %v62_v45 = vshrl.u32 %v54_v37, 16  ;;  %v63_v49 = vshrl.u32 %v55_v41, 16  ;;  %v53_v54 = vadd.s32 %v51_v11, %v44_v46 }
   0xe   :  { %v74_v47 = vxor.u32 %v66_v39, %v58_v31  ;;  %v75_v48 = vxor.u32 %v67_v40, %v59_v32  ;;  %v72_v51 = vxor.u32 %v64_v43, %v56_v35  ;;  %v60_v58 = vshrl.u32 %v52_v50, 16 }
   0xf   :  { %v73_v52 = vxor.u32 %v65_v44, %v57_v36  ;;  %v70_v53 = vxor.u32 %v62_v45, %v54_v37  ;;  %v71_v57 = vxor.u32 %v63_v49, %v55_v41  ;;  %v61_v1 = vshrl.u32 %v53_v54, 16 }
  0x10   :  { %v82_v55 = vmul.u32 2146121005, %v74_v47  ;;  %v83_v56 = vmul.u32 2146121005, %v75_v48  ;;  %v80_v59 = vmul.u32 2146121005, %v72_v51  ;;  %v68_v5 = vxor.u32 %v60_v58, %v52_v50 }
  0x11   :  { %v81_v60 = vmul.u32 2146121005, %v73_v52  ;;  %v78_v61 = vmul.u32 2146121005, %v70_v53  ;;  %v79_v0 = vmul.u32 2146121005, %v71_v57  ;;  %v69_v12 = vxor.u32 %v61_v1, %v53_v54 }
  0x12   :  { %v90_v62 = vshrl.u32 %v82_v55, 15  ;;  %v91_v63 = vshrl.u32 %v83_v56, 15  ;;  %v88_v2 = vshrl.u32 %v80_v59, 15  ;;  %v76_v15 = vmul.u32 2146121005, %v68_v5  ;;  %v132_v50 = vld [vmem:[%s899_s1] sm:$0xff] }
  0x13   :  { %v89_v3 = vshrl.u32 %v81_v60, 15  ;;  %v86_v4 = vshrl.u32 %v78_v61, 15  ;;  %v87_v8 = vshrl.u32 %v79_v0, 15  ;;  %v77_v20 = vmul.u32 2146121005, %v69_v12  ;;  %v133_v51 = vld [vmem:[%s899_s1 + $0x8] sm:$0xff] }
  0x14   :  { %v98_v6 = vxor.u32 %v90_v62, %v82_v55  ;;  %v99_v7 = vxor.u32 %v91_v63, %v83_v56  ;;  %v96_v11 = vxor.u32 %v88_v2, %v80_v59  ;;  %v536_v21 = vpack.c.bf16 %v652_v10, %v650_v9  ;;  %v134_v9 = vld [vmem:[%s899_s1 + $0x10] sm:$0xff]  ;;  %v135_v10 = vld [vmem:[%s899_s1 + $0x18] sm:$0xff]  ;;  %v176_v59 = vld [vmem:[%s900_s3 + $0x60] sm:$0xff] }
  0x15   :  { %v97_v13 = vxor.u32 %v89_v3, %v81_v60  ;;  %v94_v14 = vxor.u32 %v86_v4, %v78_v61  ;;  %v95_v19 = vxor.u32 %v87_v8, %v79_v0  ;;  %v84_v29 = vshrl.u32 %v76_v15, 15  ;;  %v178_v55 = vld [vmem:[%s900_s3 + $0x70] sm:$0xff]  ;;  %v179_v56 = vld [vmem:[%s900_s3 + $0x78] sm:$0xff]  ;;  %v177_v60 = vld [vmem:[%s900_s3 + $0x68] sm:$0xff] }
  0x16   :  { %v106_v16 = vmul.u32 2221713035, %v98_v6  ;;  %v107_v17 = vmul.u32 2221713035, %v99_v7  ;;  %v104_v22 = vmul.u32 2221713035, %v96_v11  ;;  %v539_v45 = vpack.c.bf16 %v659_v25, %v657_v18 }
  0x17   :  { %v105_v23 = vmul.u32 2221713035, %v97_v13  ;;  %v102_v24 = vmul.u32 2221713035, %v94_v14  ;;  %v103_v28 = vmul.u32 2221713035, %v95_v19  ;;  %v92_v37 = vxor.u32 %v84_v29, %v76_v15 }
  0x18   :  { %v114_v26 = vshrl.u32 %v106_v16, 16  ;;  %v115_v27 = vshrl.u32 %v107_v17, 16  ;;  %v112_v30 = vshrl.u32 %v104_v22, 16  ;;  %v85_v33 = vshrl.u32 %v77_v20, 15  ;;  %v692_v61 = vld [vmem:[%s901_s2] sm:$0xff]  ;;  %v697_v62 = vld [vmem:[%s901_s2 + $0x10] sm:$0xff] }
  0x19   :  { %v113_v31 = vshrl.u32 %v105_v23, 16  ;;  %v110_v32 = vshrl.u32 %v102_v24, 16  ;;  %v111_v36 = vshrl.u32 %v103_v28, 16  ;;  %v100_v43 = vmul.u32 2221713035, %v92_v37  ;;  %v174_v0 = vld [vmem:[%s900_s3 + $0x50] sm:$0xff] }
  0x1a   :  { %v122_v34 = vxor.u32 %v114_v26, %v106_v16  ;;  %v123_v35 = vxor.u32 %v115_v27, %v107_v17  ;;  %v120_v38 = vxor.u32 %v112_v30, %v104_v22  ;;  %v93_v41 = vxor.u32 %v85_v33, %v77_v20  ;;  %v175_v1 = vld [vmem:[%s900_s3 + $0x58] sm:$0xff]  ;;  %v172_v3 = vld [vmem:[%s900_s3 + $0x40] sm:$0xff]  ;;  %v173_v4 = vld [vmem:[%s900_s3 + $0x48] sm:$0xff] }
  0x1b   :  { %v121_v39 = vxor.u32 %v113_v31, %v105_v23  ;;  %v118_v40 = vxor.u32 %v110_v32, %v102_v24  ;;  %v119_v42 = vxor.u32 %v111_v36, %v103_v28  ;;  %v142_v46 = vmul.f32 2.0, %v134_v9  ;;  %v170_v6 = vld [vmem:[%s900_s3 + $0x30] sm:$0xff]  ;;  %v171_v7 = vld [vmem:[%s900_s3 + $0x38] sm:$0xff]  ;;  %v724_v12 = vld [vmem:[%s901_s2 + $0x8] sm:$0xff] }
  0x1c   :  { %vm130_vm0 = vcmp.ge.s32.totalorder %v122_v34, 0  ;;  %vm131_vm1 = vcmp.ge.s32.totalorder %v123_v35, 0  ;;  %vm128_vm3 = vcmp.ge.s32.totalorder %v120_v38, 0  ;;  %v101_v44 = vmul.u32 2221713035, %v93_v41  ;;  %v729_v11 = vld [vmem:[%s901_s2 + $0x18] sm:$0xff] }
  0x1d   :  { %vm535_vm2 = vmpackc.low %vm131_vm1, %vm130_vm0  ;;  %vm129_vm4 = vcmp.ge.s32.totalorder %v121_v39, 0  ;;  %v143_v47 = vmul.f32 2.0, %v135_v10  ;;  %v108_v48 = vshrl.u32 %v100_v43, 16  ;;  %vm126_vm6 = vcmp.ge.s32.totalorder %v118_v40, 0  ;;  %v168_v13 = vld [vmem:[%s900_s3 + $0x20] sm:$0xff]  ;;  %v169_v14 = vld [vmem:[%s900_s3 + $0x28] sm:$0xff] }
  0x1e   :  { %537 = vmatpush.bf16.msk.msra.mxu0 %vm535_vm2, %v536_v21  ;;  %597 = vmatpush.bf16.msk.msra.mxu1 %vm535_vm2, %v536_v21  ;;  %vm538_vm5 = vmpackc.low %vm129_vm4, %vm128_vm3  ;;  %v109_v49 = vshrl.u32 %v101_v44, 16  ;;  %vm127_vm7 = vcmp.ge.s32.totalorder %v119_v42, 0  ;;  %v140_v25 = vmul.f32 2.0, %v132_v50  ;;  %v141_v54 = vmul.f32 2.0, %v133_v51  ;;  %v166_v16 = vld [vmem:[%s900_s3 + $0x10] sm:$0xff]  ;;  %v167_v17 = vld [vmem:[%s900_s3 + $0x18] sm:$0xff] }
  0x1f   :  { %v116_v52 = vxor.u32 %v108_v48, %v100_v43  ;;  %v542_v18 = vpack.c.bf16 %v143_v47, %v142_v46  ;;  %vm541_vm8 = vmpackc.low %vm127_vm7, %vm126_vm6  ;;  %v188_v58 = vpack.c.bf16 %v179_v56, %v178_v55  ;;  %v187_v63 = vpack.c.bf16 %v177_v60, %v176_v59  ;;  %v164_v20 = vld [vmem:[%s900_s3] sm:$0xff]  ;;  %v165_v21 = vld [vmem:[%s900_s3 + $0x8] sm:$0xff] }
  0x20   :  { %v117_v53 = vxor.u32 %v109_v49, %v101_v44  ;;  %v545_v57 = vpack.c.bf16 %v141_v54, %v140_v25  ;;  %v186_v2 = vpack.c.bf16 %v175_v1, %v174_v0  ;;  %v185_v5 = vpack.c.bf16 %v173_v4, %v172_v3  ;;  %v565_v31 = vld [vmem:[%s900_s3 + $0xf0] sm:$0xff]  ;;  %v566_v32 = vld [vmem:[%s900_s3 + $0xf8] sm:$0xff]  ;;  %v563_v33 = vld [vmem:[%s900_s3 + $0xe0] sm:$0xff] }
  0x21   :  { %vm124_vm9 = vcmp.ge.s32.totalorder %v116_v52, 0  ;;  %v184_v8 = vpack.c.bf16 %v171_v7, %v170_v6  ;;  %v183_v15 = vpack.c.bf16 %v169_v14, %v168_v13  ;;  %v182_v19 = vpack.c.bf16 %v167_v17, %v166_v16  ;;  %v564_v35 = vld [vmem:[%s900_s3 + $0xe8] sm:$0xff]  ;;  %v561_v37 = vld [vmem:[%s900_s3 + $0xd0] sm:$0xff]  ;;  %v562_v38 = vld [vmem:[%s900_s3 + $0xd8] sm:$0xff] }
  0x22   :  { %540 = vmatpush.bf16.msk.msra.mxu0 %vm538_vm5, %v539_v45  ;;  %598 = vmatpush.bf16.msk.msra.mxu1 %vm538_vm5, %v539_v45  ;;  %vm125_vm10 = vcmp.ge.s32.totalorder %v117_v53, 0  ;;  %v181_v22 = vpack.c.bf16 %v165_v21, %v164_v20  ;;  %v325_v34 = vpack.c.bf16 %v566_v32, %v565_v31  ;;  %v324_v36 = vpack.c.bf16 %v564_v35, %v563_v33  ;;  %v559_v9 = vld [vmem:[%s900_s3 + $0xc0] sm:$0xff]  ;;  %v560_v10 = vld [vmem:[%s900_s3 + $0xc8] sm:$0xff]  ;;  %v557_v46 = vld [vmem:[%s900_s3 + $0xb0] sm:$0xff] }
  0x23   :  { %vm544_vm11 = vmpackc.low %vm125_vm10, %vm124_vm9  ;;  %v323_v40 = vpack.c.bf16 %v562_v38, %v561_v37  ;;  %v322_v41 = vpack.c.bf16 %v560_v10, %v559_v9  ;;  %v558_v47 = vld [vmem:[%s900_s3 + $0xb8] sm:$0xff]  ;;  %v555_v49 = vld [vmem:[%s900_s3 + $0xa0] sm:$0xff] }
  0x24   :  { %330 = vmatpush.bf16.msra.mxu2 %v325_v34  ;;  %v321_v48 = vpack.c.bf16 %v558_v47, %v557_v46  ;;  %v556_v50 = vld [vmem:[%s900_s3 + $0xa8] sm:$0xff]  ;;  %v553_v52 = vld [vmem:[%s900_s3 + $0x90] sm:$0xff]  ;;  %v554_v53 = vld [vmem:[%s900_s3 + $0x98] sm:$0xff] }
  0x25   :  { %v320_v51 = vpack.c.bf16 %v556_v50, %v555_v49  ;;  %v551_v25 = vld [vmem:[%s900_s3 + $0x80] sm:$0xff]  ;;  %v552_v54 = vld [vmem:[%s900_s3 + $0x88] sm:$0xff]  ;;  %v586_v9 = vld [vmem:[%s900_s3 + $0x170] sm:$0xff] }
  0x26   :  { %543 = vmatpush.bf16.msk.msra.mxu0 %vm541_vm8, %v542_v18  ;;  %599 = vmatpush.bf16.msk.msra.mxu1 %vm541_vm8, %v542_v18  ;;  %v319_v18 = vpack.c.bf16 %v554_v53, %v553_v52  ;;  %v318_v55 = vpack.c.bf16 %v552_v54, %v551_v25  ;;  %v587_v10 = vld [vmem:[%s900_s3 + $0x178] sm:$0xff]  ;;  %v581_v49 = vld [vmem:[%s900_s3 + $0x148] sm:$0xff] }
  0x27   :  { %v583_v46 = vld [vmem:[%s900_s3 + $0x158] sm:$0xff]  ;;  %v577_v25 = vld [vmem:[%s900_s3 + $0x128] sm:$0xff] }
  0x28   :  { %331 = vmatpush.bf16.msra.mxu2 %v324_v36  ;;  %v579_v52 = vld [vmem:[%s900_s3 + $0x138] sm:$0xff] }
  0x2a   :  { %546 = vmatpush.bf16.msk.msra.mxu0 %vm544_vm11, %v545_v57  ;;  %600 = vmatpush.bf16.msk.msra.mxu1 %vm544_vm11, %v545_v57  ;;  %v605_v57 = vld [vmem:[%s902_s4] ss:$0 sm:$0xff] }
  0x2c   :  { %332 = vmatpush.bf16.msra.mxu2 %v323_v40 }
  0x2d   :  { %547 = vmatmul.msk.bf16.vlgmr.msra.gmra.mxu0 %vm213_vm12, %v692_v61  ;;  %549 = vmatmul.msk.bf16.vlgmr.msra.gmra.mxu1 %vm213_vm12, %v697_v62 }
  0x2e   :  { %262 = vmatpush.bf16.msrb.mxu1 %v188_v58 }
  0x30   :  { %333 = vmatpush.bf16.msra.mxu2 %v322_v41  ;;  %v584_v41 = vld [vmem:[%s900_s3 + $0x160] sm:$0xff] }
  0x32   :  { %263 = vmatpush.bf16.msrb.mxu1 %v187_v63 }
  0x34   :  { %334 = vmatpush.bf16.msra.mxu2 %v321_v48  ;;  %v580_v48 = vld [vmem:[%s900_s3 + $0x140] sm:$0xff] }
  0x35   :  { %v426_v50 = vpack.c.bf16 %v581_v49, %v580_v48 }
  0x36   :  { %264 = vmatpush.bf16.msrb.mxu1 %v186_v2 }
  0x38   :  { %335 = vmatpush.bf16.msra.mxu2 %v320_v51  ;;  %v578_v51 = vld [vmem:[%s900_s3 + $0x130] sm:$0xff] }
  0x39   :  { %v425_v53 = vpack.c.bf16 %v579_v52, %v578_v51 }
  0x3a   :  { %265 = vmatpush.bf16.msrb.mxu1 %v185_v5 }
  0x3c   :  { %336 = vmatpush.bf16.msra.mxu2 %v319_v18  ;;  %v576_v18 = vld [vmem:[%s900_s3 + $0x120] sm:$0xff] }
  0x3d   :  { %548 = vmatmul.msk.bf16.gmra.mxu0 %vm213_vm12, %v724_v12  ;;  %550 = vmatmul.msk.bf16.gmra.mxu1 %vm213_vm12, %v729_v11  ;;  %v424_v54 = vpack.c.bf16 %v577_v25, %v576_v18 }
  0x3e   :  { %266 = vmatpush.bf16.msrb.mxu1 %v184_v8 }
  0x40   :  { %337 = vmatpush.bf16.msra.mxu2 %v318_v55  ;;  %v574_v55 = vld [vmem:[%s900_s3 + $0x110] sm:$0xff] }
  0x42   :  { %267 = vmatpush.bf16.msrb.mxu1 %v183_v15 }
  0x46   :  { %268 = vmatpush.bf16.msrb.mxu1 %v182_v19 }
  0x4a   :  { %269 = vmatpush.bf16.msrb.mxu1 %v181_v22 }
  0xaa   :  { %v235_v23 = vpop.f32.mrf.mxu0  ;;  %v245_v29 = vpop.f32.mrf.mxu1 }
  0xb2   :  { %v237_v24 = vpop.f32.mrf.mxu0  ;;  %v247_v39 = vpop.f32.mrf.mxu1 }
  0xb3   :  { %v255_v26 = vpack.c.bf16 %v237_v24, %v235_v23  ;;  %v257_v42 = vpack.c.bf16 %v247_v39, %v245_v29 }
  0xb5   :  { %270 = vmatmul.bf16.vlgmr.msrb.gmra.mxu1 %v255_v26 }
  0xba   :  { %v240_v27 = vpop.f32.mrf.mxu0  ;;  %v250_v43 = vpop.f32.mrf.mxu1 }
  0xc2   :  { %v242_v28 = vpop.f32.mrf.mxu0  ;;  %v252_v44 = vpop.f32.mrf.mxu1 }
  0xc3   :  { %v256_v30 = vpack.c.bf16 %v242_v28, %v240_v27  ;;  %v258_v45 = vpack.c.bf16 %v252_v44, %v250_v43  ;;  %v585_v43 = vld [vmem:[%s900_s3 + $0x168] sm:$0xff] }
  0xc4   :  { %v428_v44 = vpack.c.bf16 %v585_v43, %v584_v41 }
  0xc5   :  { %275 = vmatmul.bf16.gmra.mxu1 %v256_v30 }
  0xd5   :  { %280 = vmatmul.bf16.gmra.mxu1 %v257_v42  ;;  %v429_v42 = vpack.c.bf16 %v587_v10, %v586_v9 }
  0xd7   :  { %434 = vmatpush.bf16.msrb.mxu0 %v429_v42 }
  0xdb   :  { %435 = vmatpush.bf16.msrb.mxu0 %v428_v44  ;;  %v607_v44 = vld [vmem:[%s902_s4 + $0x2] ss:$0 sm:$0xff] }
  0xe5   :  { %285 = vmatmul.bf16.gmra.mxu1 %v258_v45  ;;  %v582_v45 = vld [vmem:[%s900_s3 + $0x150] sm:$0xff] }
  0xe6   :  { %v427_v47 = vpack.c.bf16 %v583_v46, %v582_v45 }
  0xe8   :  { %436 = vmatpush.bf16.msrb.mxu0 %v427_v47 }
  0xec   :  { %437 = vmatpush.bf16.msrb.mxu0 %v426_v50 }
  0xf0   :  { %438 = vmatpush.bf16.msrb.mxu0 %v425_v53 }
  0xf4   :  { %439 = vmatpush.bf16.msrb.mxu0 %v424_v54 }
 0x132   :  { %v271_v56 = vpop.f32.mrf.mxu1 }
 0x133   :  { %v272_v58 = vadd.f32 %v605_v57, %v271_v56  ;;  %v575_v56 = vld [vmem:[%s900_s3 + $0x118] sm:$0xff] }
 0x135   :  { %v291_v63 = vmax.f32 %v272_v58, 0.0  ;;  %v572_v58 = vld [vmem:[%s900_s3 + $0x100] sm:$0xff] }
 0x13a   :  { %v273_v59 = vpop.f32.mrf.mxu1 }
 0x13b   :  { %v274_v60 = vadd.f32 %v605_v57, %v273_v59  ;;  %v573_v59 = vld [vmem:[%s900_s3 + $0x108] sm:$0xff] }
 0x13d   :  { %v292_v0 = vmax.f32 %v274_v60, 0.0  ;;  %v422_v60 = vpack.c.bf16 %v573_v59, %v572_v58 }
 0x13f   :  { %v326_v1 = vpack.c.bf16 %v292_v0, %v291_v63 }
 0x141   :  { %338 = vmatmul.bf16.vlgmr.msra.gmra.mxu2 %v326_v1  ;;  %v606_v1 = vld [vmem:[%s902_s4 + $0x1] ss:$0 sm:$0xff] }
 0x142   :  { %v276_v2 = vpop.f32.mrf.mxu1 }
 0x143   :  { %v277_v3 = vadd.f32 %v605_v57, %v276_v2 }
 0x145   :  { %v293_v6 = vmax.f32 %v277_v3, 0.0 }
 0x14a   :  { %v278_v4 = vpop.f32.mrf.mxu1 }
 0x14b   :  { %v279_v5 = vadd.f32 %v605_v57, %v278_v4 }
 0x14d   :  { %v294_v7 = vmax.f32 %v279_v5, 0.0 }
 0x14f   :  { %v327_v8 = vpack.c.bf16 %v294_v7, %v293_v6 }
 0x151   :  { %343 = vmatmul.bf16.gmra.mxu2 %v327_v8 }
 0x152   :  { %v281_v13 = vpop.f32.mrf.mxu1 }
 0x153   :  { %v282_v14 = vadd.f32 %v605_v57, %v281_v13 }
 0x155   :  { %v295_v17 = vmax.f32 %v282_v14, 0.0 }
 0x15a   :  { %v283_v15 = vpop.f32.mrf.mxu1 }
 0x15b   :  { %v284_v16 = vadd.f32 %v605_v57, %v283_v15 }
 0x15d   :  { %v296_v19 = vmax.f32 %v284_v16, 0.0 }
 0x15f   :  { %v328_v20 = vpack.c.bf16 %v296_v19, %v295_v17 }
 0x161   :  { %348 = vmatmul.bf16.gmra.mxu2 %v328_v20 }
 0x162   :  { %v286_v21 = vpop.f32.mrf.mxu1 }
 0x163   :  { %v287_v22 = vadd.f32 %v605_v57, %v286_v21 }
 0x165   :  { %v297_v26 = vmax.f32 %v287_v22, 0.0 }
 0x16a   :  { %v288_v23 = vpop.f32.mrf.mxu1 }
 0x16b   :  { %v289_v24 = vadd.f32 %v605_v57, %v288_v23  ;;  %v423_v57 = vpack.c.bf16 %v575_v56, %v574_v55 }
 0x16d   :  { %v298_v27 = vmax.f32 %v289_v24, 0.0  ;;  %440 = vmatpush.bf16.msrb.mxu0 %v423_v57 }
 0x16f   :  { %v329_v28 = vpack.c.bf16 %v298_v27, %v297_v26 }
 0x171   :  { %353 = vmatmul.bf16.gmra.mxu2 %v329_v28  ;;  %441 = vmatpush.bf16.msrb.mxu0 %v422_v60 }
 0x1c4   :  { %v339_v29 = vpop.f32.mrf.mxu2 }
 0x1cc   :  { %v341_v30 = vpop.f32.mrf.mxu2 }
 0x1cd   :  { %v359_v40 = vpack.c.bf16 %v341_v30, %v339_v29 }
 0x1d4   :  { %v344_v31 = vpop.f32.mrf.mxu2 }
 0x1dc   :  { %v346_v32 = vpop.f32.mrf.mxu2 }
 0x1dd   :  { %v360_v39 = vpack.c.bf16 %v346_v32, %v344_v31 }
 0x1e4   :  { %v349_v33 = vpop.f32.mrf.mxu2 }
 0x1ec   :  { %v351_v34 = vpop.f32.mrf.mxu2 }
 0x1ed   :  { %v361_v38 = vpack.c.bf16 %v351_v34, %v349_v33 }
 0x1f4   :  { %v354_v35 = vpop.f32.mrf.mxu2 }
 0x1fc   :  { %v356_v36 = vpop.f32.mrf.mxu2 }
 0x1fd   :  { %v362_v37 = vpack.c.bf16 %v356_v36, %v354_v35 }
 0x1ff   :  { %370 = vmatpush.bf16.msrb.mxu2 %v362_v37  ;;  %601 = vmatpush.bf16.msra.mxu3 %v362_v37 }
 0x203   :  { %371 = vmatpush.bf16.msrb.mxu2 %v361_v38  ;;  %602 = vmatpush.bf16.msra.mxu3 %v361_v38 }
 0x207   :  { %372 = vmatpush.bf16.msrb.mxu2 %v360_v39  ;;  %603 = vmatpush.bf16.msra.mxu3 %v360_v39 }
 0x20b   :  { %373 = vmatpush.bf16.msrb.mxu2 %v359_v40  ;;  %604 = vmatpush.bf16.msra.mxu3 %v359_v40 }
 0x20e   :  { %568 = vmatmul.msk.bf16.vlgmr.msrb.gmra.mxu2 %vm213_vm12, %v692_v61  ;;  %569 = vmatmul.msk.bf16.vlgmr.msra.gmra.mxu3 %vm213_vm12, %v724_v12 }
 0x21e   :  { %570 = vmatmul.msk.bf16.gmra.mxu3 %vm213_vm12, %v697_v62 }
 0x22e   :  { %571 = vmatmul.msk.bf16.gmra.mxu3 %vm213_vm12, %v729_v11 }
 0x291   :  { %v375_v63 = vpop.f32.mrf.mxu2  ;;  %v380_v0 = vpop.f32.mrf.mxu3 }
 0x292   :  { %v376_v2 = vadd.f32 %v606_v1, %v375_v63  ;;  %v381_v14 = vadd.f32 %v606_v1, %v380_v0 }
 0x294   :  { %v395_v6 = vmax.f32 %v376_v2, 0.0  ;;  %v397_v16 = vmax.f32 %v381_v14, 0.0 }
 0x299   :  { %v377_v3 = vpop.f32.mrf.mxu2  ;;  %v382_v5 = vpop.f32.mrf.mxu3 }
 0x29a   :  { %v378_v4 = vadd.f32 %v606_v1, %v377_v3  ;;  %v383_v15 = vadd.f32 %v606_v1, %v382_v5 }
 0x29c   :  { %v396_v7 = vmax.f32 %v378_v4, 0.0  ;;  %v398_v17 = vmax.f32 %v383_v15, 0.0 }
 0x29e   :  { %v430_v8 = vpack.c.bf16 %v396_v7, %v395_v6  ;;  %v431_v19 = vpack.c.bf16 %v398_v17, %v397_v16 }
 0x2a0   :  { %442 = vmatmul.bf16.vlgmr.msrb.gmra.mxu0 %v430_v8 }
 0x2a1   :  { %v385_v13 = vpop.f32.mrf.mxu3 }
 0x2a2   :  { %v386_v21 = vadd.f32 %v606_v1, %v385_v13 }
 0x2a4   :  { %v399_v24 = vmax.f32 %v386_v21, 0.0 }
 0x2a9   :  { %v387_v20 = vpop.f32.mrf.mxu3 }
 0x2aa   :  { %v388_v22 = vadd.f32 %v606_v1, %v387_v20 }
 0x2ac   :  { %v400_v26 = vmax.f32 %v388_v22, 0.0 }
 0x2ae   :  { %v432_v27 = vpack.c.bf16 %v400_v26, %v399_v24 }
 0x2b0   :  { %447 = vmatmul.bf16.gmra.mxu0 %v431_v19 }
 0x2b1   :  { %v390_v23 = vpop.f32.mrf.mxu3 }
 0x2b2   :  { %v391_v29 = vadd.f32 %v606_v1, %v390_v23 }
 0x2b4   :  { %v401_v31 = vmax.f32 %v391_v29, 0.0 }
 0x2b9   :  { %v392_v28 = vpop.f32.mrf.mxu3 }
 0x2ba   :  { %v393_v30 = vadd.f32 %v606_v1, %v392_v28 }
 0x2bc   :  { %v402_v32 = vmax.f32 %v393_v30, 0.0 }
 0x2be   :  { %v433_v33 = vpack.c.bf16 %v402_v32, %v401_v31 }
 0x2c0   :  { %452 = vmatmul.bf16.gmra.mxu0 %v432_v27 }
 0x2d0   :  { %457 = vmatmul.bf16.gmra.mxu0 %v433_v33 }
 0x31d   :  { %v443_v34 = vpop.f32.mrf.mxu0 }
 0x325   :  { %v445_v35 = vpop.f32.mrf.mxu0 }
 0x326   :  { %v463_v43 = vpack.c.bf16 %v445_v35, %v443_v34 }
 0x32d   :  { %v448_v36 = vpop.f32.mrf.mxu0 }
 0x335   :  { %v450_v37 = vpop.f32.mrf.mxu0 }
 0x336   :  { %v464_v42 = vpack.c.bf16 %v450_v37, %v448_v36 }
 0x33d   :  { %v453_v38 = vpop.f32.mrf.mxu0 }
 0x345   :  { %v455_v39 = vpop.f32.mrf.mxu0 }
 0x346   :  { %v465_v41 = vpack.c.bf16 %v455_v39, %v453_v38 }
 0x34d   :  { %v458_v40 = vpop.f32.mrf.mxu0 }
 0x355   :  { %v460_v9 = vpop.f32.mrf.mxu0 }
 0x356   :  { %v466_v10 = vpack.c.bf16 %v460_v9, %v458_v40 }
 0x358   :  { %474 = vmatpush.bf16.msrb.mxu3 %v466_v10 }
 0x35c   :  { %475 = vmatpush.bf16.msrb.mxu3 %v465_v41 }
 0x360   :  { %476 = vmatpush.bf16.msrb.mxu3 %v464_v42 }
 0x364   :  { %477 = vmatpush.bf16.msrb.mxu3 %v463_v43 }
 0x367   :  { %589 = vmatmul.msk.bf16.vlgmr.msrb.gmra.mxu3 %vm213_vm12, %v692_v61 }
 0x377   :  { %590 = vmatmul.msk.bf16.gmra.mxu3 %vm213_vm12, %v724_v12 }
 0x387   :  { %591 = vmatmul.msk.bf16.gmra.mxu3 %vm213_vm12, %v697_v62 }
 0x397   :  { %592 = vmatmul.msk.bf16.gmra.mxu3 %vm213_vm12, %v729_v11 }
 0x3ea   :  { %v479_v45 = vpop.f32.mrf.mxu3 }
 0x3eb   :  { %v480_v46 = vadd.f32 %v607_v44, %v479_v45 }
 0x3ed   :  { %v499_v47 = vmax.f32 %v480_v46, 0.0 }
 0x3ef   :  { %507 = vst [vmem:[%s903_s5] sm:$0xff] %v499_v47 }
 0x3f2   :  { %v481_v61 = vpop.f32.mrf.mxu3 }
 0x3f3   :  { %v482_v48 = vadd.f32 %v607_v44, %v481_v61 }
 0x3f5   :  { %v500_v12 = vmax.f32 %v482_v48, 0.0 }
 0x3f7   :  { %508 = vst [vmem:[%s903_s5 + $0x8] sm:$0xff] %v500_v12 }
 0x3fa   :  { %v484_v62 = vpop.f32.mrf.mxu3 }
 0x3fb   :  { %v485_v11 = vadd.f32 %v607_v44, %v484_v62 }
 0x3fd   :  { %v501_v49 = vmax.f32 %v485_v11, 0.0 }
 0x3ff   :  { %509 = vst [vmem:[%s903_s5 + $0x10] sm:$0xff] %v501_v49 }
 0x402   :  { %v486_v50 = vpop.f32.mrf.mxu3 }
 0x403   :  { %v487_v51 = vadd.f32 %v607_v44, %v486_v50 }
 0x405   :  { %v502_v52 = vmax.f32 %v487_v51, 0.0 }
 0x407   :  { %510 = vst [vmem:[%s903_s5 + $0x18] sm:$0xff] %v502_v52 }
 0x40a   :  { %v489_v53 = vpop.f32.mrf.mxu3 }
 0x40b   :  { %v490_v18 = vadd.f32 %v607_v44, %v489_v53 }
 0x40d   :  { %v503_v25 = vmax.f32 %v490_v18, 0.0 }
 0x40f   :  { %511 = vst [vmem:[%s903_s5 + $0x20] sm:$0xff] %v503_v25 }
 0x412   :  { %v491_v54 = vpop.f32.mrf.mxu3 }
 0x413   :  { %v492_v55 = vadd.f32 %v607_v44, %v491_v54 }
 0x415   :  { %v504_v56 = vmax.f32 %v492_v55, 0.0 }
 0x417   :  { %512 = vst [vmem:[%s903_s5 + $0x28] sm:$0xff] %v504_v56 }
 0x41a   :  { %v494_v57 = vpop.f32.mrf.mxu3 }
 0x41b   :  { %v495_v58 = vadd.f32 %v607_v44, %v494_v57 }
 0x41d   :  { %v505_v59 = vmax.f32 %v495_v58, 0.0 }
 0x41f   :  { %513 = vst [vmem:[%s903_s5 + $0x30] sm:$0xff] %v505_v59 }
 0x422   :  { %v496_v60 = vpop.f32.mrf.mxu3 }
 0x423   :  { %v497_v63 = vadd.f32 %v607_v44, %v496_v60 }
 0x425   :  { %v506_v0 = vmax.f32 %v497_v63, 0.0 }
 0x427   :  { %514 = vst [vmem:[%s903_s5 + $0x38] sm:$0xff] %v506_v0 }

</bundles_post_ra>
